<compile_context>
chip_gen: v7x
topology: tpu7x:2x2x1
jax: 0.10.0
libtpu: 0.0.40
codegen_flags: <defaults>
</compile_context>

<pallas_src>
import jax
import jax.numpy as jnp
from jax.experimental import pallas as pl
from jax.experimental.pallas import tpu as pltpu


def _vlfusion_kernel(fv_ref, fl_ref, wv_ref, wl_ref, blp_ref, o_ref):
    """One grid step: project + fuse `bpg` batches into x0 slabs.

    fv_ref : (bpg, C, hw)    f32, channel-first (free reshape of NCHW input)
    fl_ref : (bpg, nl, L)    f32, exactly as given by the caller (L = 768)
    wv_ref : (C, C)          bf16, (in, out) layout
    wl_ref : (L, C)          bf16, (in, out) layout
    blp_ref: (3, C)          f32, rows = [v_bias, l_bias, pr]
    o_ref  : (bpg, C, n_pad) f32
    """
    bpg, c_out, n_pad = o_ref.shape
    hw = fv_ref.shape[2]
    nl = fl_ref.shape[1]
    tail_w = n_pad - hw - nl          # >= 1: pr row + lane padding rows

    bv = blp_ref[0:1, :]              # (1, C) f32
    bl = blp_ref[1:2, :]              # (1, C) f32
    pr = blp_ref[2:3, :]              # (1, C) f32

    # Tail rows = [pr ; zeros]; shared by every batch in this step.
    row = jax.lax.broadcasted_iota(jnp.int32, (tail_w, c_out), 0)
    tail = jnp.where(row == 0, pr, jnp.float32(0.0))          # (tail_w, C)

    wv = wv_ref[...]                  # resident bf16 weights (loaded once)
    wl = wl_ref[...]

    for b in range(bpg):              # static unroll; bpg is 1 or bs (small)
        xv = fv_ref[b].astype(jnp.bfloat16)                   # (C, hw)
        xl = fl_ref[b].astype(jnp.bfloat16)                   # (nl, L)

        # pv = relu(fv^T @ Wv + bv), token-major (hw, C).  The PyTorch
        # permute(0, 2, 1) is absorbed as a trans-LHS contraction on the MXU.
        pv = jax.lax.dot_general(xv, wv, (((0,), (0,)), ((), ())),
                                 preferred_element_type=jnp.float32)
        pv = jnp.maximum(pv + bv, 0.0)

        # pl = relu(fl @ Wl + bl), token-major (nl, C).  fl is consumed in its
        # natural layout, so no host-side transpose / extra XLA launch.
        pl_ = jax.lax.dot_general(xl, wl, (((1,), (0,)), ((), ())),
                                  preferred_element_type=jnp.float32)
        pl_ = jnp.maximum(pl_ + bl, 0.0)

        # Assemble the token-major slab in-register (sublane-aligned concat:
        # hw, nl, tail_w are all multiples of 8 at the shapes used here),
        # flip it with one fully tile-aligned transpose (n_pad % 128 == 0,
        # C % 8 == 0) and write the whole 128-lane-wide tile with a single
        # unmasked store.
        slab_tok = jnp.concatenate([pv, pl_, tail], axis=0)   # (n_pad, C)
        o_ref[b] = slab_tok.T.astype(o_ref.dtype)             # (C, n_pad)


def _default_batches_per_step(bs):
    """Collapse the batch grid on single-TensorCore chips (v5e/v6e)."""
    try:
        kind = jax.devices()[0].device_kind.lower()
    except Exception:
        kind = ""
    single_tc = ("v5e" in kind) or ("v5 lite" in kind) or ("v6" in kind)
    return bs if single_tc else 1


def init_vlfusion_params(key, hidden_dim=256):
    """Parameter init matching the PyTorch module's shapes.

    Weights are kept in bf16 (MXU-native, halves weight HBM traffic); biases
    and the pr embedding stay f32 (bias add / ReLU run in f32 in the kernel).
    """
    k1, k2, k3, k4, k5 = jax.random.split(key, 5)
    return {
        # v_proj: nn.Linear(256, 256) stored as (in, out)
        "v_w": (jax.random.normal(k1, (256, 256), jnp.float32) * 0.02
                ).astype(jnp.bfloat16),
        "v_b": jax.random.normal(k2, (256,), jnp.float32) * 0.02,
        # l_proj: nn.Linear(768, 256) stored as (in, out)
        "l_w": (jax.random.normal(k3, (768, 256), jnp.float32) * 0.02
                ).astype(jnp.bfloat16),
        "l_b": jax.random.normal(k4, (256,), jnp.float32) * 0.02,
        # pr: nn.Embedding(1, hidden_dim)
        "pr": jax.random.normal(k5, (1, hidden_dim), jnp.float32),
    }


def vlfusion_forward(params, fv, fl, batches_per_step=None):
    """fv: [bs, 256, h, w] (NCHW), fl: [bs, n_l, 768].

    Returns (x0, mask):
      x0:   [bs, 256, n_pad] f32, n_pad = round_up(h*w + n_l + 1, 128).
            x0[:, :, :h*w+n_l+1] == torch.cat((pv, pl, pr), dim=2); the padded
            tail is zero.
      mask: [bs, n_pad] bool; False for real tokens, True for the pad tokens
            (so a masked downstream transformer ignores them).
    """
    bs, c, h, w = fv.shape
    hw = h * w
    _, nl, l_dim = fl.shape
    wv, wl = params["v_w"], params["l_w"]
    cin, cout = wv.shape
    assert c == cin and l_dim == wl.shape[0]
    assert params["pr"].shape == (1, cout)

    if batches_per_step is None:
        batches_per_step = _default_batches_per_step(bs)
    bpg = max(1, min(bs, batches_per_step))
    assert bs % bpg == 0

    n_tok = hw + nl + 1
    n_pad = int(pl.cdiv(n_tok, 128)) * 128            # lane-dense output width

    fv_cf = fv.reshape(bs, c, hw)                     # contiguous reshape (free)
    # One (3, C) slab for [v_bias, l_bias, pr] -> a single tiny DMA.
    bias_pack = jnp.stack(
        [params["v_b"].astype(jnp.float32),
         params["l_b"].astype(jnp.float32),
         params["pr"].reshape(cout).astype(jnp.float32)], axis=0)

    # TODO(synk): for real DETR feature maps (hw ~ 1k-4k tokens) add a
    #             token-axis grid dimension to the fv/out BlockSpecs so the
    #             per-step blocks stay well inside scoped VMEM.
    x0 = pl.pallas_call(
        _vlfusion_kernel,
        out_shape=jax.ShapeDtypeStruct((bs, cout, n_pad), jnp.float32),
        grid_spec=pltpu.PrefetchScalarGridSpec(
            num_scalar_prefetch=0,
            grid=(bs // bpg,),
            in_specs=[
                pl.BlockSpec((bpg, c, hw), lambda i: (i, 0, 0)),      # fv (C-first)
                pl.BlockSpec((bpg, nl, l_dim), lambda i: (i, 0, 0)),  # fl (as stored)
                pl.BlockSpec((cin, cout), lambda i: (0, 0)),          # v_w (resident)
                pl.BlockSpec((l_dim, cout), lambda i: (0, 0)),        # l_w (resident)
                pl.BlockSpec((3, cout), lambda i: (0, 0)),            # [bv; bl; pr]
            ],
            out_specs=pl.BlockSpec((bpg, cout, n_pad), lambda i: (i, 0, 0)),
        ),
        compiler_params=pltpu.CompilerParams(
            dimension_semantics=("parallel",),   # batch split across TCs on v7x
        ),
    )(fv_cf, fl, wv, wl, bias_pack)

    mask = jnp.broadcast_to(jnp.arange(n_pad) >= n_tok, (bs, n_pad))
    return x0, mask


if __name__ == "__main__":
    key = jax.random.PRNGKey(0)
    k_fv, k_fl, k_p = jax.random.split(key, 3)

    bs, c, h, w = 2, 256, 8, 8      # c fixed at 256 by v_proj
    n_l = 8                         # language tokens; last dim fixed at 768 by l_proj

    fv = jax.random.normal(k_fv, (bs, c, h, w), jnp.float32)
    fl = jax.random.normal(k_fl, (bs, n_l, 768), jnp.float32)
    params = init_vlfusion_params(k_p, hidden_dim=256)

    x0, mask = jax.jit(vlfusion_forward)(params, fv, fl)
    jax.block_until_ready(x0)
    jax.block_until_ready(mask)

    hw = h * w
    n_tok = hw + n_l + 1
    n_pad = int(pl.cdiv(n_tok, 128)) * 128

    # Plain-JAX reference of the same math (bf16-rounded operands, f32 accum).
    wv_f = params["v_w"].astype(jnp.float32)
    wl_f = params["l_w"].astype(jnp.float32)
    fv_tok = jnp.transpose(fv.reshape(bs, c, hw), (0, 2, 1))
    fv_tok = fv_tok.astype(jnp.bfloat16).astype(jnp.float32)
    fl_r = fl.astype(jnp.bfloat16).astype(jnp.float32)
    ref_pv = jnp.maximum(fv_tok @ wv_f + params["v_b"], 0.0)
    ref_pl = jnp.maximum(fl_r @ wl_f + params["l_b"], 0.0)
    ref_x0 = jnp.concatenate(
        (jnp.transpose(ref_pv, (0, 2, 1)),
         jnp.transpose(ref_pl, (0, 2, 1)),
         jnp.broadcast_to(params["pr"], (bs, c))[:, :, None]),
        axis=2)

    assert x0.shape == (bs, c, n_pad)
    assert mask.shape == (bs, n_pad) and mask.dtype == jnp.bool_
    assert jnp.allclose(x0[:, :, :n_tok], ref_x0, atol=2e-3, rtol=2e-3)
    assert not bool(mask[:, :n_tok].any())
    if n_pad > n_tok:
        assert bool(mask[:, n_tok:].all())
        assert bool(jnp.all(x0[:, :, n_tok:] == 0.0))

    print("KERNEL_OK")
</pallas_src>

<mosaic_0001>
module attributes {stable_mosaic.version = 11 : i64} {
  func.func @_vlfusion_kernel(%arg0: i32, %arg1: memref<1x256x64xf32, #tpu.memory_space<vmem>>, %arg2: memref<1x8x768xf32, #tpu.memory_space<vmem>>, %arg3: memref<256x256xbf16, #tpu.memory_space<vmem>>, %arg4: memref<768x256xbf16, #tpu.memory_space<vmem>>, %arg5: memref<3x256xf32, #tpu.memory_space<vmem>>, %arg6: memref<1x256x128xf32, #tpu.memory_space<vmem>>) attributes {dimension_semantics = [#tpu.dimension_semantics<parallel>], iteration_bounds = array<i64: 2>, scalar_prefetch = 0 : i64, scratch_operands = 0 : i64, tpu.core_type = #tpu.core_type<tc>, window_params = [{transform_indices = @transform_0, window_bounds = array<i64: 1, 256, 64>}, {transform_indices = @transform_1, window_bounds = array<i64: 1, 8, 768>}, {pipeline_mode = #tpu.pipeline_mode<synchronous>, transform_indices = @transform_2, window_bounds = array<i64: 256, 256>}, {pipeline_mode = #tpu.pipeline_mode<synchronous>, transform_indices = @transform_3, window_bounds = array<i64: 768, 256>}, {pipeline_mode = #tpu.pipeline_mode<synchronous>, transform_indices = @transform_4, window_bounds = array<i64: 3, 256>}, {transform_indices = @transform_5, window_bounds = array<i64: 1, 256, 128>}]} {
    %c0 = arith.constant 0 : index
    %c0_0 = arith.constant 0 : index
    %0 = vector.load %arg5[%c0, %c0_0] : memref<3x256xf32, #tpu.memory_space<vmem>>, vector<1x256xf32>
    %c1 = arith.constant 1 : index
    %c0_1 = arith.constant 0 : index
    %1 = vector.load %arg5[%c1, %c0_1] : memref<3x256xf32, #tpu.memory_space<vmem>>, vector<1x256xf32>
    %c2 = arith.constant 2 : index
    %c0_2 = arith.constant 0 : index
    %2 = vector.load %arg5[%c2, %c0_2] : memref<3x256xf32, #tpu.memory_space<vmem>>, vector<1x256xf32>
    %3 = tpu.iota {dimensions = array<i32: 0>} : vector<56x256xi32>
    %c0_i32 = arith.constant 0 : i32
    %4 = vector.broadcast %c0_i32 : i32 to vector<56x256xi32>
    %5 = arith.cmpi eq, %3, %4 : vector<56x256xi32>
    %cst = arith.constant 0.000000e+00 : f32
    %6 = vector.shape_cast %2 : vector<1x256xf32> to vector<1x256xf32>
    %7 = vector.broadcast %6 : vector<1x256xf32> to vector<56x256xf32>
    %8 = vector.broadcast %cst : f32 to vector<56x256xf32>
    %9 = arith.select %5, %7, %8 : vector<56x256xi1>, vector<56x256xf32>
    %c0_3 = arith.constant 0 : index
    %c0_4 = arith.constant 0 : index
    %10 = vector.load %arg3[%c0_3, %c0_4] : memref<256x256xbf16, #tpu.memory_space<vmem>>, vector<256x256xbf16>
    %c0_5 = arith.constant 0 : index
    %c0_6 = arith.constant 0 : index
    %11 = vector.load %arg4[%c0_5, %c0_6] : memref<768x256xbf16, #tpu.memory_space<vmem>>, vector<768x256xbf16>
    %c0_7 = arith.constant 0 : index
    %c0_8 = arith.constant 0 : index
    %c0_9 = arith.constant 0 : index
    %12 = vector.load %arg1[%c0_7, %c0_8, %c0_9] : memref<1x256x64xf32, #tpu.memory_space<vmem>>, vector<1x256x64xf32>
    %13 = vector.shape_cast %12 : vector<1x256x64xf32> to vector<256x64xf32>
    %14 = arith.truncf %13 : vector<256x64xf32> to vector<256x64xbf16>
    %c0_10 = arith.constant 0 : index
    %c0_11 = arith.constant 0 : index
    %c0_12 = arith.constant 0 : index
    %15 = vector.load %arg2[%c0_10, %c0_11, %c0_12] : memref<1x8x768xf32, #tpu.memory_space<vmem>>, vector<1x8x768xf32>
    %16 = vector.shape_cast %15 : vector<1x8x768xf32> to vector<8x768xf32>
    %17 = arith.truncf %16 : vector<8x768xf32> to vector<8x768xbf16>
    %cst_13 = arith.constant dense<0.000000e+00> : vector<64x256xf32>
    %18 = tpu.matmul %14, %10, %cst_13 {dimension_numbers = #tpu.dot_dimension_numbers<[0], [0], [1], [1], [0, 1, 1, 1], [], []>} : vector<256x64xbf16>, vector<256x256xbf16>, vector<64x256xf32> -> vector<64x256xf32>
    %19 = vector.broadcast %0 : vector<1x256xf32> to vector<64x256xf32>
    %20 = arith.addf %18, %19 : vector<64x256xf32>
    %cst_14 = arith.constant 0.000000e+00 : f32
    %21 = vector.broadcast %cst_14 : f32 to vector<64x256xf32>
    %22 = arith.maximumf %20, %21 : vector<64x256xf32>
    %cst_15 = arith.constant dense<0.000000e+00> : vector<8x256xf32>
    %23 = tpu.matmul %17, %11, %cst_15 {dimension_numbers = #tpu.dot_dimension_numbers<[1], [0], [0], [1], [0, 0, 1, 1], [], []>} : vector<8x768xbf16>, vector<768x256xbf16>, vector<8x256xf32> -> vector<8x256xf32>
    %24 = vector.broadcast %1 : vector<1x256xf32> to vector<8x256xf32>
    %25 = arith.addf %23, %24 : vector<8x256xf32>
    %cst_16 = arith.constant 0.000000e+00 : f32
    %26 = vector.broadcast %cst_16 : f32 to vector<8x256xf32>
    %27 = arith.maximumf %25, %26 : vector<8x256xf32>
    %28 = tpu.concatenate %22, %27, %9 in 0 : vector<64x256xf32>, vector<8x256xf32>, vector<56x256xf32> -> vector<128x256xf32>
    %29 = tpu.transpose %28, [1, 0] : vector<128x256xf32> -> vector<256x128xf32>
    %c0_17 = arith.constant 0 : index
    %c0_18 = arith.constant 0 : index
    %c0_19 = arith.constant 0 : index
    %30 = vector.load %arg6[%c0_17, %c0_18, %c0_19] : memref<1x256x128xf32, #tpu.memory_space<vmem>>, vector<1x256x128xf32>
    %31 = vector.shape_cast %30 : vector<1x256x128xf32> to vector<256x128xf32>
    %32 = vector.shape_cast %29 : vector<256x128xf32> to vector<1x256x128xf32>
    tpu.vector_store %arg6[%c0_17, %c0_18, %c0_19], %32 {strides = array<i32>} : memref<1x256x128xf32, #tpu.memory_space<vmem>>, vector<1x256x128xf32>,
    return
  }
  func.func @transform_0(%arg0: i32) -> (i32, i32, i32) {
    %c0_i32 = arith.constant 0 : i32
    %c0_i32_0 = arith.constant 0 : i32
    %c0_i32_1 = arith.constant 0 : i32
    return %arg0, %c0_i32, %c0_i32_0 : i32, i32, i32
  }
  func.func @transform_1(%arg0: i32) -> (i32, i32, i32) {
    %c0_i32 = arith.constant 0 : i32
    %c0_i32_0 = arith.constant 0 : i32
    %c0_i32_1 = arith.constant 0 : i32
    return %arg0, %c0_i32, %c0_i32_0 : i32, i32, i32
  }
  func.func @transform_2(%arg0: i32) -> (i32, i32) {
    %c0_i32 = arith.constant 0 : i32
    %c0_i32_0 = arith.constant 0 : i32
    %c0_i32_1 = arith.constant 0 : i32
    return %c0_i32, %c0_i32_0 : i32, i32
  }
  func.func @transform_3(%arg0: i32) -> (i32, i32) {
    %c0_i32 = arith.constant 0 : i32
    %c0_i32_0 = arith.constant 0 : i32
    %c0_i32_1 = arith.constant 0 : i32
    return %c0_i32, %c0_i32_0 : i32, i32
  }
  func.func @transform_4(%arg0: i32) -> (i32, i32) {
    %c0_i32 = arith.constant 0 : i32
    %c0_i32_0 = arith.constant 0 : i32
    %c0_i32_1 = arith.constant 0 : i32
    return %c0_i32, %c0_i32_0 : i32, i32
  }
  func.func @transform_5(%arg0: i32) -> (i32, i32, i32) {
    %c0_i32 = arith.constant 0 : i32
    %c0_i32_0 = arith.constant 0 : i32
    %c0_i32_1 = arith.constant 0 : i32
    return %arg0, %c0_i32, %c0_i32_0 : i32, i32, i32
  }
}

</mosaic_0001>

<bundles_post_ra>
// kernel: vlfusion_forward.1
= control target key start
LH: loop header
LB: loop body
LE: loop exit
PB: predicated region body
PF: predicated region fallthrough
CT: control target
= control target key end

     0   :  { %10 = vsyncpa [#allocation3], 0  ;;  %s2794_s0 = inlined_call_operand.vmem [shape: f32[2,256,64], index: 0, kind: input, shape index: {}]   ;;  %s2795_s1 = inlined_call_operand.hbm [shape: f32[2,8,768], index: 1, kind: input, shape index: {}]   ;;  %s2796_s2 = inlined_call_operand.hbm [shape: bf16[256,256], index: 2, kind: input, shape index: {}]   ;;  %s2797_s3 = inlined_call_operand.vmem [shape: bf16[768,256], index: 3, kind: input, shape index: {}]   ;;  %s2798_s4 = inlined_call_operand.vmem [shape: f32[3,256], index: 4, kind: input, shape index: {}]   ;;  %s2799_s5 = inlined_call_operand.hbm [shape: f32[2,256,128], index: 5, kind: output, shape index: {}]  }
   0x1   :  { %12 = vsyncpa [#allocation3 + $0x1], 0 }
   0x2   :  { %13 = vsyncpa [#allocation6], 0 }
   0x3   :  { %14 = vsyncpa [#allocation4], 0 }
   0x4   :  { %16 = vsyncpa [#allocation4 + $0x1], 0  ;;  %s2201_s18 = smov 0   ;;  %s2203_s19 = smov 0  }
   0x5   :  { %s2205_s20 = smov 0   ;;  %s2207_s21 = smov 0  }
   0x6 LB: > { %s2222_s22 = sadd.s32 4294967295, %s2162_s21   ;;  %s1622_s23 = sadd.s32 4294967294, %s2162_s21   ;;  %s2162_s21 = sphi %s2207_s21, %s2819_s21   ;;  %s2158_s20 = sphi %s2205_s20, %s2818_s20   ;;  %s2154_s19 = sphi %s2203_s19, %s2817_s19   ;;  %s2150_s18 = sphi %s2201_s18, %s2816_s18  }
   0x7   : > { %p68_p0 = scmp.ne.s32.totalorder %s2154_s19, %s2150_s18  ;;  %p2800_p1 = scmp.eq.s32.totalorder %s2222_s22, 0 }
   0x8   : > { %p161_p3 = scmp.eq.s32.totalorder %s1622_s23, 1  ;;  %p1623_p5 = scmp.ge.s32.totalorder %s2162_s21, 1 }
   0x9   : > { %p2231_p4 = por %p2800_p1, %p68_p0  ;;  %p168_p7 = scmp.lt.s32.totalorder %s2162_s21, 3 }
   0xa   : > { %p2236_p6 = por %p161_p3, %p68_p0  ;;  %s2164_s27 = smov [#allocation5]  }
   0xb   : > { %s2803_s24 = scalar_select %p2231_p4, 1, 0 }
   0xc   : > { %s2804_s25 = scalar_select %p2236_p6, 1, 0 }
   0xd   : > { %p2241_p8 = pnand %p1623_p5, %p168_p7  ;;  %s180_s28 = sshll.u32 %s2164_s27, 4  ;;  %s2245_s28 = int_to_ptr.vmem [resolvable:$true] %s180_s28 }
   0xe   : > { %s2257_s30 = sadd.s32 1, %s2162_s21   ;;  %s55_s6 = sadd.s32 1, %s2158_s20 }
   0xf   : > { %s2805_s26 = scalar_select %p2241_p8, 1, 0 }
  0x10   : > { %p1788_p9 = pneg %p2241_p8  ;;  %s52_s7 = ssub.s32 %s2162_s21, %s2257_s30 }
  0x11   : > { %s2034_s10 = scalar_lea.hbm %s2796_s2, 4096 }
  0x12   : > { %p2252_p11 = pnand %p1788_p9, %p2800_p1  ;;  %p2035_p12 = scmp.ne.s32.totalorder %s2796_s2, %s2034_s10 }
  0x13   : > { %p2041_p5 = scmp.lt.u32.totalorder %s2034_s10, %s2796_s2 }
  0x14   : > { %p2036_p13 = pneg %p2252_p11 }
  0x16   : > { %p2037_p0 = pnand %p2036_p13, %p2035_p12 }
  0x18   : > { %p2038_p3 = pneg %p2037_p0 }
  0x1a   : > { %p2043_p7 = pnand %p2041_p5, %p2038_p3 }
  0x1c   : > { %2046 = shalt.err (!%p2043_p7)
}
  0x1d   : > { %s2047_s15 = scalar_lea.vmem %s2245_s28, 4096  ;;  %p2055_p2 = scmp.lt.s32.totalorder %s2245_s28, %s2245_s28 }
  0x1e   : > { %p2048_p9 = scmp.ne.s32.totalorder %s2245_s28, %s2047_s15  ;;  %p2056_p6 = scmp.lt.s32.totalorder %s2047_s15, %s2047_s15 }
  0x20   : > { %p2050_p10 = pnand %p2048_p9, %p2036_p13  ;;  %p2057_p4 = por %p2056_p6, %p2055_p2 }
  0x22   : > { %p2051_p1 = pneg %p2050_p10 }
  0x24   : > { %p2058_p8 = pnand %p2057_p4, %p2051_p1 }
  0x26   : > { %2061 = shalt.err (!%p2058_p8)
}
  0x27   : > { %s2165_s16 = smov 128   ;;  %s2166_s17 = smov 8  }
  0x28   : > { %1791 = dma.hbm_to_vmem [thread:$0]  (!%p2252_p11), %s2796_s2, 4096, %s2245_s28, [#allocation6], %s2165_s16, %s2165_s16, %s2166_s17  }
  0x29   : > { %p53_p2 = scmp.eq.s32.totalorder %s52_s7, 0  ;;  %p62_p1 = scmp.ne.s32.totalorder %s2158_s20, %s2154_s19 }
  0x2a   : > { %p63_p4 = scmp.eq.s32.totalorder %s2162_s21, 0  ;;  %p1801_p6 = scmp.lt.s32.totalorder %s2162_s21, 2 }
  0x2b   : > { %s2288_s8 = scalar_select %p53_p2, %s2158_s20, %s55_s6  }
  0x2c   : > { %p64_p8 = por %p63_p4, %p62_p1  ;;  %p2807_p10 = scmp.eq.s32.totalorder %s2222_s22, 1 }
  0x2d   : > { %s208_s10 = sand.u32 1, %s2158_s20   ;;  %s1778_s11 = smul.u32 768, %s2162_s21 }
  0x2e   : > { %p2292_p12 = por %p2807_p10, %p62_p1  ;;  %s1777_s12 = smul.u32 48, %s208_s10 }
  0x2f   : > { %p2298_p13 = pnand %p1801_p6, %p64_p8  ;;  %s2305_s6 = scalar_lea.hbm %s2795_s1, %s1778_s11 }
  0x30   : > { %s212_s13 = scalar_lea.vmem [#allocation2], %s1777_s12  ;;  %s209_s15 = scalar_lea.sflag [#allocation3], %s208_s10 }
  0x31   : > { %s220_s14 = sshll.u32 %s212_s13, 4  ;;  %s2062_s16 = scalar_lea.hbm %s2305_s6, 768  ;;  %s2307_s14 = int_to_ptr.vmem [resolvable:$true] %s220_s14 }
  0x32   : > { %p2063_p11 = scmp.ne.s32.totalorder %s2305_s6, %s2062_s16  ;;  %p2064_p0 = pneg %p2298_p13 }
  0x33   : > { %s2067_s27 = scalar_lea.hbm %s2795_s1, 1536  ;;  %p2068_p7 = scmp.lt.u32.totalorder %s2305_s6, %s2795_s1 }
  0x34   : > { %p2065_p3 = pnand %p2064_p0, %p2063_p11  ;;  %p2069_p9 = scmp.lt.u32.totalorder %s2067_s27, %s2062_s16 }
  0x35   : > { %p2071_p1 = scmp.lt.u32.totalorder %s2062_s16, %s2305_s6 }
  0x36   : > { %p2066_p5 = pneg %p2065_p3  ;;  %p2070_p2 = por %p2069_p9, %p2068_p7 }
  0x38   : > { %p2072_p4 = por %p2071_p1, %p2070_p2 }
  0x3a   : > { %p2073_p6 = pnand %p2072_p4, %p2066_p5 }
  0x3c   : > { %2076 = shalt.err (!%p2073_p6)
}
  0x3d   : > { %s2077_s10 = scalar_lea.vmem %s2307_s14, 768  ;;  %s2167_s12 = smov [#allocation2]  }
  0x3e   : > { %p2078_p8 = scmp.ne.s32.totalorder %s2307_s14, %s2077_s10  ;;  %s2082_s7 = sshll.u32 %s2167_s12, 4  ;;  %s2083_s7 = int_to_ptr.vmem [resolvable:$false] %s2082_s7 }
  0x3f   : > { %s2084_s13 = scalar_lea.vmem %s2083_s7, 1536  ;;  %p2085_p3 = scmp.lt.s32.totalorder %s2307_s14, %s2083_s7 }
  0x40   : > { %p2080_p10 = pnand %p2078_p8, %p2064_p0  ;;  %p2086_p7 = scmp.lt.s32.totalorder %s2084_s13, %s2077_s10 }
  0x42   : > { %p2081_p11 = pneg %p2080_p10  ;;  %p2087_p9 = por %p2086_p7, %p2085_p3 }
  0x44   : > { %p2088_p2 = pnand %p2087_p9, %p2081_p11 }
  0x46   : > { %2091 = shalt.err (!%p2088_p2)
}
  0x47   : > { %1795 = dma.hbm_to_vmem [thread:$0]  (!%p2298_p13), %s2305_s6, 768, %s2307_s14, %s209_s15  }
  0x48   : > { %p2810_p5 = scmp.ne.s32.totalorder %s2805_s26, 0 }
  0x49   : > { %s2337_s16 = sand.u32 (!%p2810_p5), 1, %s2154_s19   ;;  %p2811_p0 = scmp.ne.s32.totalorder (!%p2810_p5), %s2803_s24, 0 }
  0x4a   : > { %229 = sbr.rel (%p2810_p5) target bundleno = 653 (0x28d), region = 40  ;;  %s232_s23 = scalar_lea.sflag (!%p2810_p5), [#allocation3], %s2337_s16 }
  0x4b   : > { %s1779_s17 = smul.u32 (!%p2810_p5), 48, %s2337_s16 }
  0x4d   : > { %s2341_s27 = scalar_lea.vmem (!%p2810_p5), [#allocation2], %s1779_s17 }
  0x51   : > { %2137 = dma.done.wait (%p2811_p0), %s232_s23, 768  }
  0x52   : > { %2139 = vsyncadd (%p2811_p0), %s232_s23, 4294966528  ;;  %p2812_p13 = scmp.eq.s32.totalorder %s2222_s22, 0 }
  0x54   : > { %2141 = dma.done.wait (%p2812_p13), [#allocation6], 4096   ;;  %p2813_p1 = pmov %p2812_p13 }
  0x55   : > { %p271_p4 = scmp.lt.s32.totalorder %s2222_s22, 1  ;;  %v1842_v3 = vld [vmem:[%s2797_s3 + $0x104] ss:$8 sps:$4 sm:$0xff]   ;;  %v1844_v6 = vld [vmem:[%s2797_s3 + $0x100] ss:$8 sps:$4 sm:$0xff]   ;;  %s1629_s10 = sshll.u32 %s2337_s16, 8 }
  0x56   : > { %2143 = vsyncadd (%p2813_p1), [#allocation6], 4294963200  ;;  %1333 = vmatprep.subr.bf16.mxu1 %v1842_v3  ;;  %v1845_v11 = vld [vmem:[%s2797_s3 + $0x114] ss:$8 sps:$4 sm:$0xff]   ;;  %v1847_v15 = vld [vmem:[%s2797_s3 + $0x110] ss:$8 sps:$4 sm:$0xff]  }
  0x57   : > { %s272_s26 = scalar_select %p271_p4, %s2222_s22, 1  ;;  %1334 = vmatpush1.bf16.msra.mxu1 %v1844_v6  ;;  %v1848_v18 = vld [vmem:[%s2797_s3 + $0x124] ss:$8 sps:$4 sm:$0xff]   ;;  %v1850_v22 = vld [vmem:[%s2797_s3 + $0x120] ss:$8 sps:$4 sm:$0xff]  }
  0x58   : > { %1335 = vmatprep.subr.bf16.mxu1 %v1845_v11  ;;  %v1851_v26 = vld [vmem:[%s2797_s3 + $0x134] ss:$8 sps:$4 sm:$0xff]   ;;  %v1853_v30 = vld [vmem:[%s2797_s3 + $0x130] ss:$8 sps:$4 sm:$0xff]   ;;  %v1854_v34 = vld [vmem:[%s2797_s3 + $0x144] ss:$8 sps:$4 sm:$0xff]  }
  0x59   : > { %s1767_s29 = sshll.u32 %s272_s26, 8  ;;  %v1856_v38 = vld [vmem:[%s2797_s3 + $0x140] ss:$8 sps:$4 sm:$0xff]   ;;  %v1857_v42 = vld [vmem:[%s2797_s3 + $0x154] ss:$8 sps:$4 sm:$0xff]   ;;  %s2709_s12 = scalar_lea.vmem [#allocation7], %s1629_s10 }
  0x5a   : > { %s2356_s15 = scalar_lea.vmem %s2794_s0, %s1767_s29  ;;  %v1859_v45 = vld [vmem:[%s2797_s3 + $0x150] ss:$8 sps:$4 sm:$0xff]   ;;  %v1860_v49 = vld [vmem:[%s2797_s3 + $0x164] ss:$8 sps:$4 sm:$0xff]   ;;  %v1862_v53 = vld [vmem:[%s2797_s3 + $0x160] ss:$8 sps:$4 sm:$0xff]  }
  0x5b   : > { %v465_v0 = vld [vmem:[%s2356_s15 + $0x80] sm:$0xff]  ;;  %v466_v1 = vld [vmem:[%s2356_s15 + $0x88] sm:$0xff]  ;;  %v467_v7 = vld [vmem:[%s2356_s15 + $0x90] sm:$0xff]  ;;  %1336 = vmatpush1.bf16.msra.mxu1 %v1847_v15  ;;  %s1768_s7 = sshll.u32 %s2222_s22, 12  ;;  %s1527_s13 = sshll.u32 %s2709_s12, 4  ;;  %s2748_s13 = int_to_ptr.vmem [resolvable:$true] %s1527_s13 }
  0x5c   : > { %v489_v2 = vpack.c.bf16 %v466_v1, %v465_v0  ;;  %v449_v4 = vld [vmem:[%s2356_s15] sm:$0xff]  ;;  %v450_v5 = vld [vmem:[%s2356_s15 + $0x8] sm:$0xff]  ;;  %v468_v9 = vld [vmem:[%s2356_s15 + $0x98] sm:$0xff]  ;;  %1337 = vmatprep.subr.bf16.mxu1 %v1848_v18  ;;  %s2746_s23 = scalar_lea.hbm %s2799_s5, %s1768_s7  ;;  %s1514_s26 = scalar_lea.sflag [#allocation4], %s2337_s16 }
  0x5d   : > { %v481_v8 = vpack.c.bf16 %v450_v5, %v449_v4  ;;  %v490_v10 = vpack.c.bf16 %v468_v9, %v467_v7  ;;  %v451_v12 = vld [vmem:[%s2356_s15 + $0x10] sm:$0xff]  ;;  %v452_v13 = vld [vmem:[%s2356_s15 + $0x18] sm:$0xff]  ;;  %v469_v16 = vld [vmem:[%s2356_s15 + $0xa0] sm:$0xff]  ;;  %s2092_s22 = scalar_lea.vmem %s2748_s13, 4096  ;;  %s2168_s29 = smov [#allocation7]  }
  0x5e   : > { %536 = vxpose.xlu0.c.b16.start [1/8] (narrow) %v489_v2, 64  ;;  %v482_v14 = vpack.c.bf16 %v452_v13, %v451_v12  ;;  %v470_v17 = vld [vmem:[%s2356_s15 + $0xa8] sm:$0xff]  ;;  %v453_v20 = vld [vmem:[%s2356_s15 + $0x20] sm:$0xff]  ;;  %v471_v23 = vld [vmem:[%s2356_s15 + $0xb0] sm:$0xff]  ;;  %p2093_p6 = scmp.ne.s32.totalorder %s2748_s13, %s2092_s22  ;;  %s2096_s6 = sshll.u32 %s2168_s29, 4  ;;  %s2097_s6 = int_to_ptr.vmem [resolvable:$false] %s2096_s6 }
  0x5f   : > { %520 = vxpose.xlu1.c.b16.start [1/8] (narrow) %v481_v8, 64  ;;  %v491_v19 = vpack.c.bf16 %v470_v17, %v469_v16  ;;  %v454_v21 = vld [vmem:[%s2356_s15 + $0x28] sm:$0xff]  ;;  %v472_v24 = vld [vmem:[%s2356_s15 + $0xb8] sm:$0xff]  ;;  %v455_v27 = vld [vmem:[%s2356_s15 + $0x30] sm:$0xff]  ;;  %1338 = vmatpush1.bf16.msra.mxu1 %v1850_v22  ;;  %s2098_s14 = scalar_lea.vmem %s2097_s6, 8192  ;;  %p2099_p11 = scmp.lt.s32.totalorder %s2748_s13, %s2097_s6 }
  0x60   : > { %v483_v25 = vpack.c.bf16 %v454_v21, %v453_v20  ;;  %v456_v28 = vld [vmem:[%s2356_s15 + $0x38] sm:$0xff]  ;;  %v492_v29 = vpack.c.bf16 %v472_v24, %v471_v23  ;;  %v473_v31 = vld [vmem:[%s2356_s15 + $0xc0] sm:$0xff]  ;;  %v474_v32 = vld [vmem:[%s2356_s15 + $0xc8] sm:$0xff]  ;;  %1339 = vmatprep.subr.bf16.mxu1 %v1851_v26  ;;  %p2094_p8 = pnand %p2093_p6, %p2292_p12  ;;  %p2100_p3 = scmp.lt.s32.totalorder %s2098_s14, %s2092_s22 }
  0x61   : > { %v484_v33 = vpack.c.bf16 %v456_v28, %v455_v27  ;;  %v457_v35 = vld [vmem:[%s2356_s15 + $0x40] sm:$0xff]  ;;  %v458_v36 = vld [vmem:[%s2356_s15 + $0x48] sm:$0xff]  ;;  %v493_v37 = vpack.c.bf16 %v474_v32, %v473_v31  ;;  %v475_v39 = vld [vmem:[%s2356_s15 + $0xd0] sm:$0xff] }
  0x62   : > { %537 = vxpose.xlu0.c.b16.cont [2/8] (narrow) %v490_v10, 64  ;;  %v476_v40 = vld [vmem:[%s2356_s15 + $0xd8] sm:$0xff]  ;;  %v485_v41 = vpack.c.bf16 %v458_v36, %v457_v35  ;;  %v459_v43 = vld [vmem:[%s2356_s15 + $0x50] sm:$0xff]  ;;  %v477_v47 = vld [vmem:[%s2356_s15 + $0xe0] sm:$0xff]  ;;  %p2095_p10 = pneg %p2094_p8  ;;  %p2101_p7 = por %p2100_p3, %p2099_p11 }
  0x63   : > { %521 = vxpose.xlu1.c.b16.cont [2/8] (narrow) %v482_v14, 64  ;;  %1340 = vmatpush1.bf16.msra.mxu1 %v1853_v30  ;;  %v460_v44 = vld [vmem:[%s2356_s15 + $0x58] sm:$0xff]  ;;  %v494_v46 = vpack.c.bf16 %v476_v40, %v475_v39  ;;  %v478_v48 = vld [vmem:[%s2356_s15 + $0xe8] sm:$0xff]  ;;  %v461_v50 = vld [vmem:[%s2356_s15 + $0x60] sm:$0xff] }
  0x64   : > { %1341 = vmatprep.subr.bf16.mxu1 %v1854_v34  ;;  %v486_v51 = vpack.c.bf16 %v460_v44, %v459_v43  ;;  %v462_v52 = vld [vmem:[%s2356_s15 + $0x68] sm:$0xff]  ;;  %v479_v54 = vld [vmem:[%s2356_s15 + $0xf0] sm:$0xff]  ;;  %v495_v55 = vpack.c.bf16 %v478_v48, %v477_v47  ;;  %v480_v56 = vld [vmem:[%s2356_s15 + $0xf8] sm:$0xff]  ;;  %p2102_p9 = pnand %p2101_p7, %p2095_p10 }
  0x65   : > { %v1863_v57 = vld [vmem:[%s2797_s3 + $0x174] ss:$8 sps:$4 sm:$0xff]   ;;  %v1872_v58 = vld [vmem:[#allocation5 + $0x4] ss:$8 sps:$4 sm:$0xff]   ;;  %v487_v59 = vpack.c.bf16 %v462_v52, %v461_v50  ;;  %v1874_v60 = vld [vmem:[#allocation5] ss:$8 sps:$4 sm:$0xff]   ;;  %v496_v63 = vpack.c.bf16 %v480_v56, %v479_v54 }
  0x66   : > { %538 = vxpose.xlu0.c.b16.cont [3/8] (narrow) %v491_v19, 64  ;;  %v463_v61 = vld [vmem:[%s2356_s15 + $0x70] sm:$0xff]  ;;  %v464_v62 = vld [vmem:[%s2356_s15 + $0x78] sm:$0xff]  ;;  %712 = vmatprep.subr.bf16.mxu0 %v1872_v58  ;;  %v1866_v4 = vld [vmem:[%s2797_s3 + $0x184] ss:$8 sps:$4 sm:$0xff]  }
  0x67   : > { %522 = vxpose.xlu1.c.b16.cont [3/8] (narrow) %v483_v25, 64  ;;  %1342 = vmatpush1.bf16.msra.mxu1 %v1856_v38  ;;  %v1878_v0 = vld [vmem:[#allocation5 + $0x14] ss:$8 sps:$4 sm:$0xff]   ;;  %v1880_v1 = vld [vmem:[#allocation5 + $0x10] ss:$8 sps:$4 sm:$0xff]   ;;  %v488_v3 = vpack.c.bf16 %v464_v62, %v463_v61 }
  0x68   : > { %1343 = vmatprep.subr.bf16.mxu1 %v1857_v42  ;;  %713 = vmatpush1.bf16.msra.mxu0 %v1874_v60  ;;  %v1865_v2 = vld [vmem:[%s2797_s3 + $0x170] ss:$8 sps:$4 sm:$0xff]   ;;  %v1884_v5 = vld [vmem:[#allocation5 + $0x24] ss:$8 sps:$4 sm:$0xff]   ;;  %v1868_v6 = vld [vmem:[%s2797_s3 + $0x180] ss:$8 sps:$4 sm:$0xff]  }
  0x69   : > { %714 = vmatprep.subr.bf16.mxu0 %v1878_v0  ;;  %v1886_v7 = vld [vmem:[#allocation5 + $0x20] ss:$8 sps:$4 sm:$0xff]   ;;  %v1890_v8 = vld [vmem:[#allocation5 + $0x34] ss:$8 sps:$4 sm:$0xff]   ;;  %v1871_v10 = vld [vmem:[%s2797_s3 + $0x190] ss:$8 sps:$4 sm:$0xff]  }
  0x6a   : > { %539 = vxpose.xlu0.c.b16.cont [4/8] (narrow) %v492_v29, 64  ;;  %v1869_v9 = vld [vmem:[%s2797_s3 + $0x194] ss:$8 sps:$4 sm:$0xff]   ;;  %v1892_v11 = vld [vmem:[#allocation5 + $0x30] ss:$8 sps:$4 sm:$0xff]  }
  0x6b   : > { %523 = vxpose.xlu1.c.b16.cont [4/8] (narrow) %v484_v33, 64  ;;  %1344 = vmatpush1.bf16.msra.mxu1 %v1859_v45  ;;  %v1896_v12 = vld [vmem:[#allocation5 + $0x44] ss:$8 sps:$4 sm:$0xff]   ;;  %v1877_v14 = vld [vmem:[%s2797_s3 + $0x1a0] ss:$8 sps:$4 sm:$0xff]  }
  0x6c   : > { %1345 = vmatprep.subr.bf16.mxu1 %v1860_v49  ;;  %715 = vmatpush1.bf16.msra.mxu0 %v1880_v1  ;;  %v1875_v13 = vld [vmem:[%s2797_s3 + $0x1a4] ss:$8 sps:$4 sm:$0xff]   ;;  %v1898_v15 = vld [vmem:[#allocation5 + $0x40] ss:$8 sps:$4 sm:$0xff]   ;;  %v1902_v16 = vld [vmem:[#allocation5 + $0x54] ss:$8 sps:$4 sm:$0xff]  }
  0x6d   : > { %716 = vmatprep.subr.bf16.mxu0 %v1884_v5  ;;  %v1881_v17 = vld [vmem:[%s2797_s3 + $0x1b4] ss:$8 sps:$4 sm:$0xff]   ;;  %v1904_v20 = vld [vmem:[#allocation5 + $0x50] ss:$8 sps:$4 sm:$0xff]   ;;  %v1908_v22 = vld [vmem:[#allocation5 + $0x64] ss:$8 sps:$4 sm:$0xff]  }
  0x6e   : > { %540 = vxpose.xlu0.c.b16.cont [5/8] (narrow) %v493_v37, 64  ;;  %v500_v18 = vld [vmem:[%s2341_s27 + $0x18] sm:$0xff]  ;;  %v499_v38 = vld [vmem:[%s2341_s27 + $0x10] sm:$0xff]  ;;  %v502_v1 = vld [vmem:[%s2341_s27 + $0x28] sm:$0xff] }
  0x6f   : > { %524 = vxpose.xlu1.c.b16.cont [5/8] (narrow) %v485_v41, 64  ;;  %1346 = vmatpush1.bf16.msra.mxu1 %v1862_v53  ;;  %v506_v19 = vpack.c.bf16 %v500_v18, %v500_v18  ;;  %v1883_v21 = vld [vmem:[%s2797_s3 + $0x1b0] ss:$8 sps:$4 sm:$0xff]   ;;  %v1887_v23 = vld [vmem:[%s2797_s3 + $0x1c4] ss:$8 sps:$4 sm:$0xff]   ;;  %v505_v41 = vpack.c.bf16 %v499_v38, %v499_v38 }
  0x70   : > { %1347 = vmatprep.subr.bf16.mxu1 %v1863_v57  ;;  %717 = vmatpush1.bf16.msra.mxu0 %v1886_v7  ;;  %v1910_v24 = vld [vmem:[#allocation5 + $0x60] ss:$8 sps:$4 sm:$0xff]   ;;  %v1914_v26 = vld [vmem:[#allocation5 + $0x74] ss:$8 sps:$4 sm:$0xff]   ;;  %v1916_v28 = vld [vmem:[#allocation5 + $0x70] ss:$8 sps:$4 sm:$0xff]  }
  0x71   : > { %718 = vmatprep.subr.bf16.mxu0 %v1890_v8  ;;  %1365 = vmatprep.mubr.bf16.mxu1 %v506_v19  ;;  %v1889_v25 = vld [vmem:[%s2797_s3 + $0x1c0] ss:$8 sps:$4 sm:$0xff]   ;;  %v1893_v27 = vld [vmem:[%s2797_s3 + $0x1d4] ss:$8 sps:$4 sm:$0xff]   ;;  %v1895_v29 = vld [vmem:[%s2797_s3 + $0x1d0] ss:$8 sps:$4 sm:$0xff]  }
  0x72   : > { %541 = vxpose.xlu0.c.b16.cont [6/8] (narrow) %v494_v46, 64  ;;  %v1920_v30 = vld [vmem:[#allocation5 + $0x84] ss:$8 sps:$4 sm:$0xff]   ;;  %v1922_v32 = vld [vmem:[#allocation5 + $0x80] ss:$8 sps:$4 sm:$0xff]  }
  0x73   : > { %525 = vxpose.xlu1.c.b16.cont [6/8] (narrow) %v486_v51, 64  ;;  %1348 = vmatpush1.bf16.msra.mxu1 %v1865_v2  ;;  %v1899_v31 = vld [vmem:[%s2797_s3 + $0x1e4] ss:$8 sps:$4 sm:$0xff]   ;;  %v1901_v33 = vld [vmem:[%s2797_s3 + $0x1e0] ss:$8 sps:$4 sm:$0xff]  }
  0x74   : > { %1349 = vmatprep.subr.bf16.mxu1 %v1866_v4  ;;  %719 = vmatpush1.bf16.msra.mxu0 %v1892_v11  ;;  %v1926_v34 = vld [vmem:[#allocation5 + $0x94] ss:$8 sps:$4 sm:$0xff]   ;;  %v1907_v36 = vld [vmem:[%s2797_s3 + $0x1f0] ss:$8 sps:$4 sm:$0xff]   ;;  %v1932_v39 = vld [vmem:[#allocation5 + $0xa4] ss:$8 sps:$4 sm:$0xff]  }
  0x75   : > { %720 = vmatprep.subr.bf16.mxu0 %v1896_v12  ;;  %v1905_v35 = vld [vmem:[%s2797_s3 + $0x1f4] ss:$8 sps:$4 sm:$0xff]   ;;  %v1928_v37 = vld [vmem:[#allocation5 + $0x90] ss:$8 sps:$4 sm:$0xff]   ;;  %v1913_v40 = vld [vmem:[%s2797_s3 + $0x204] ss:$8 sps:$4 sm:$0xff]  }
  0x76   : > { %542 = vxpose.xlu0.c.b16.cont [7/8] (narrow) %v495_v55, 64  ;;  %v1934_v42 = vld [vmem:[#allocation5 + $0xa0] ss:$8 sps:$4 sm:$0xff]   ;;  %v1938_v44 = vld [vmem:[#allocation5 + $0xb4] ss:$8 sps:$4 sm:$0xff]  }
  0x77   : > { %526 = vxpose.xlu1.c.b16.cont [7/8] (narrow) %v487_v59, 64  ;;  %1350 = vmatpush1.bf16.msra.mxu1 %v1868_v6  ;;  %v1911_v43 = vld [vmem:[%s2797_s3 + $0x200] ss:$8 sps:$4 sm:$0xff]   ;;  %v1919_v45 = vld [vmem:[%s2797_s3 + $0x214] ss:$8 sps:$4 sm:$0xff]  }
  0x78   : > { %1351 = vmatprep.subr.bf16.mxu1 %v1869_v9  ;;  %721 = vmatpush1.bf16.msra.mxu0 %v1898_v15  ;;  %v1940_v46 = vld [vmem:[#allocation5 + $0xb0] ss:$8 sps:$4 sm:$0xff]   ;;  %v1944_v48 = vld [vmem:[#allocation5 + $0xc4] ss:$8 sps:$4 sm:$0xff]   ;;  %v1946_v50 = vld [vmem:[#allocation5 + $0xc0] ss:$8 sps:$4 sm:$0xff]  }
  0x79   : > { %722 = vmatprep.subr.bf16.mxu0 %v1902_v16  ;;  %v1917_v47 = vld [vmem:[%s2797_s3 + $0x210] ss:$8 sps:$4 sm:$0xff]   ;;  %v1925_v49 = vld [vmem:[%s2797_s3 + $0x224] ss:$8 sps:$4 sm:$0xff]   ;;  %v1923_v51 = vld [vmem:[%s2797_s3 + $0x220] ss:$8 sps:$4 sm:$0xff]  }
  0x7a   : > { %543 = vxpose.xlu0.c.b16.end [8/8] (narrow) %v496_v63, 64  ;;  %v1950_v52 = vld [vmem:[#allocation5 + $0xd4] ss:$8 sps:$4 sm:$0xff]   ;;  %v1952_v54 = vld [vmem:[#allocation5 + $0xd0] ss:$8 sps:$4 sm:$0xff]  }
  0x7b   : > { %527 = vxpose.xlu1.c.b16.end [8/8] (narrow) %v488_v3, 64  ;;  %1352 = vmatpush1.bf16.msra.mxu1 %v1871_v10  ;;  %v1931_v53 = vld [vmem:[%s2797_s3 + $0x234] ss:$8 sps:$4 sm:$0xff]   ;;  %v1929_v55 = vld [vmem:[%s2797_s3 + $0x230] ss:$8 sps:$4 sm:$0xff]   ;;  %v508_v3 = vpack.c.bf16 %v502_v1, %v502_v1 }
  0x7c   : > { %1353 = vmatprep.subr.bf16.mxu1 %v1875_v13  ;;  %723 = vmatpush1.bf16.msra.mxu0 %v1904_v20  ;;  %v1956_v56 = vld [vmem:[#allocation5 + $0xe4] ss:$8 sps:$4 sm:$0xff]   ;;  %v1958_v58 = vld [vmem:[#allocation5 + $0xe0] ss:$8 sps:$4 sm:$0xff]   ;;  %v1962_v60 = vld [vmem:[#allocation5 + $0xf4] ss:$8 sps:$4 sm:$0xff]  }
  0x7d   : > { %724 = vmatprep.subr.bf16.mxu0 %v1908_v22  ;;  %v1937_v57 = vld [vmem:[%s2797_s3 + $0x244] ss:$8 sps:$4 sm:$0xff]   ;;  %v1935_v59 = vld [vmem:[%s2797_s3 + $0x240] ss:$8 sps:$4 sm:$0xff]   ;;  %v1943_v61 = vld [vmem:[%s2797_s3 + $0x254] ss:$8 sps:$4 sm:$0xff]  }
  0x7e   : > { %v1964_v62 = vld [vmem:[#allocation5 + $0xf0] ss:$8 sps:$4 sm:$0xff]   ;;  %v1970_v0 = vld [vmem:[%s2797_s3 + $0x4] ss:$8 sps:$4 sm:$0xff]   ;;  %v1947_v4 = vld [vmem:[%s2797_s3 + $0x260] ss:$8 sps:$4 sm:$0xff]  }
  0x7f   : > { %1354 = vmatpush1.bf16.msra.mxu1 %v1877_v14  ;;  %v1941_v63 = vld [vmem:[%s2797_s3 + $0x250] ss:$8 sps:$4 sm:$0xff]   ;;  %v1949_v2 = vld [vmem:[%s2797_s3 + $0x264] ss:$8 sps:$4 sm:$0xff]   ;;  %v1955_v5 = vld [vmem:[%s2797_s3 + $0x274] ss:$8 sps:$4 sm:$0xff]  }
  0x80   : > { %1355 = vmatprep.subr.bf16.mxu1 %v1881_v17  ;;  %725 = vmatpush1.bf16.msra.mxu0 %v1910_v24  ;;  %v1953_v6 = vld [vmem:[%s2797_s3 + $0x270] ss:$8 sps:$4 sm:$0xff]   ;;  %v1961_v7 = vld [vmem:[%s2797_s3 + $0x284] ss:$8 sps:$4 sm:$0xff]   ;;  %v1959_v8 = vld [vmem:[%s2797_s3 + $0x280] ss:$8 sps:$4 sm:$0xff]  }
  0x81   : > { %726 = vmatprep.subr.bf16.mxu0 %v1914_v26  ;;  %v1967_v9 = vld [vmem:[%s2797_s3 + $0x294] ss:$8 sps:$4 sm:$0xff]   ;;  %v1965_v10 = vld [vmem:[%s2797_s3 + $0x290] ss:$8 sps:$4 sm:$0xff]   ;;  %v1973_v11 = vld [vmem:[%s2797_s3 + $0x2a4] ss:$8 sps:$4 sm:$0xff]  }
  0x82   : > { %v1971_v12 = vld [vmem:[%s2797_s3 + $0x2a0] ss:$8 sps:$4 sm:$0xff]   ;;  %v1979_v15 = vld [vmem:[%s2797_s3 + $0x2b4] ss:$8 sps:$4 sm:$0xff]   ;;  %v1977_v18 = vld [vmem:[%s2797_s3 + $0x2b0] ss:$8 sps:$4 sm:$0xff]  }
  0x83   : > { %1356 = vmatpush1.bf16.msra.mxu1 %v1883_v21  ;;  %v1968_v14 = vld [vmem:[%s2797_s3] ss:$8 sps:$4 sm:$0xff]   ;;  %v1976_v16 = vld [vmem:[%s2797_s3 + $0x14] ss:$8 sps:$4 sm:$0xff]   ;;  %v1974_v19 = vld [vmem:[%s2797_s3 + $0x10] ss:$8 sps:$4 sm:$0xff]  }
  0x84   : > { %1357 = vmatprep.subr.bf16.mxu1 %v1887_v23  ;;  %727 = vmatpush1.bf16.msra.mxu0 %v1916_v28  ;;  %v1985_v20 = vld [vmem:[%s2797_s3 + $0x2c4] ss:$8 sps:$4 sm:$0xff]   ;;  %v1983_v23 = vld [vmem:[%s2797_s3 + $0x2c0] ss:$8 sps:$4 sm:$0xff]   ;;  %v2031_v1 = vld [vmem:[%s2797_s3 + $0xf0] ss:$8 sps:$4 sm:$0xff]  }
  0x85   : > { %728 = vmatprep.subr.bf16.mxu0 %v1920_v30  ;;  %v1982_v22 = vld [vmem:[%s2797_s3 + $0x24] ss:$8 sps:$4 sm:$0xff]   ;;  %v1980_v24 = vld [vmem:[%s2797_s3 + $0x20] ss:$8 sps:$4 sm:$0xff]   ;;  %v1986_v30 = vld [vmem:[%s2797_s3 + $0x30] ss:$8 sps:$4 sm:$0xff]  }
  0x87   : > { %1358 = vmatpush1.bf16.msra.mxu1 %v1889_v25  ;;  %v1991_v25 = vld [vmem:[%s2797_s3 + $0x2d4] ss:$8 sps:$4 sm:$0xff]  }
  0x88   : > { %1359 = vmatprep.subr.bf16.mxu1 %v1893_v27  ;;  %729 = vmatpush1.bf16.msra.mxu0 %v1922_v32  ;;  %v1988_v27 = vld [vmem:[%s2797_s3 + $0x34] ss:$8 sps:$4 sm:$0xff]   ;;  %v1994_v32 = vld [vmem:[%s2797_s3 + $0x44] ss:$8 sps:$4 sm:$0xff]  }
  0x89   : > { %730 = vmatprep.subr.bf16.mxu0 %v1926_v34  ;;  %v1992_v34 = vld [vmem:[%s2797_s3 + $0x40] ss:$8 sps:$4 sm:$0xff]  }
  0x8b   : > { %1360 = vmatpush1.bf16.msra.mxu1 %v1895_v29  ;;  %v1989_v29 = vld [vmem:[%s2797_s3 + $0x2d0] ss:$8 sps:$4 sm:$0xff]  }
  0x8c   : > { %1361 = vmatprep.subr.bf16.mxu1 %v1899_v31  ;;  %731 = vmatpush1.bf16.msra.mxu0 %v1928_v37  ;;  %v1997_v31 = vld [vmem:[%s2797_s3 + $0x2e4] ss:$8 sps:$4 sm:$0xff]   ;;  %v2000_v37 = vld [vmem:[%s2797_s3 + $0x54] ss:$8 sps:$4 sm:$0xff]  }
  0x8d   : > { %732 = vmatprep.subr.bf16.mxu0 %v1932_v39  ;;  %v2001_v39 = vld [vmem:[%s2797_s3 + $0x2f0] ss:$8 sps:$4 sm:$0xff]  }
  0x8f   : > { %1362 = vmatpush1.bf16.msra.mxu1 %v1901_v33  ;;  %v1995_v33 = vld [vmem:[%s2797_s3 + $0x2e0] ss:$8 sps:$4 sm:$0xff]  }
  0x90   : > { %1363 = vmatprep.subr.bf16.mxu1 %v1905_v35  ;;  %733 = vmatpush1.bf16.msra.mxu0 %v1934_v42  ;;  %v2003_v35 = vld [vmem:[%s2797_s3 + $0x2f4] ss:$8 sps:$4 sm:$0xff]   ;;  %v2006_v42 = vld [vmem:[%s2797_s3 + $0x64] ss:$8 sps:$4 sm:$0xff]  }
  0x91   : > { %734 = vmatprep.subr.bf16.mxu0 %v1938_v44 }
  0x93   : > { %1364 = vmatpush1.bf16.msra.mxu1 %v1907_v36 }
  0x94   : > { %1374 = vmatprep.subr.bf16.mxu1 %v1913_v40  ;;  %735 = vmatpush1.bf16.msra.mxu0 %v1940_v46  ;;  %v501_v40 = vld [vmem:[%s2341_s27 + $0x20] sm:$0xff] }
  0x95   : > { %736 = vmatprep.subr.bf16.mxu0 %v1944_v48  ;;  %v507_v44 = vpack.c.bf16 %v501_v40, %v501_v40  ;;  %v2009_v48 = vld [vmem:[%s2797_s3 + $0x74] ss:$8 sps:$4 sm:$0xff]  }
  0x96   : > { %1366 = vmatmul.mubr.bf16.vlgmr.msra.gmra.mrb[0].mxu1 %v505_v41  ;;  %v1998_v41 = vld [vmem:[%s2797_s3 + $0x50] ss:$8 sps:$4 sm:$0xff]  }
  0x97   : > { %1375 = vmatpush1.bf16.msra.mxu1 %v1911_v43  ;;  %1406 = vmatprep.mubr.bf16.mxu1 %v508_v3  ;;  %v498_v43 = vld [vmem:[%s2341_s27 + $0x8] sm:$0xff] }
  0x98   : > { %1376 = vmatprep.subr.bf16.mxu1 %v1919_v45  ;;  %737 = vmatpush1.bf16.msra.mxu0 %v1946_v50  ;;  %v2004_v45 = vld [vmem:[%s2797_s3 + $0x60] ss:$8 sps:$4 sm:$0xff]   ;;  %v2012_v50 = vld [vmem:[%s2797_s3 + $0x84] ss:$8 sps:$4 sm:$0xff]  }
  0x99   : > { %738 = vmatprep.subr.bf16.mxu0 %v1950_v52  ;;  %v2015_v52 = vld [vmem:[%s2797_s3 + $0x94] ss:$8 sps:$4 sm:$0xff]  }
  0x9b   : > { %1377 = vmatpush1.bf16.msra.mxu1 %v1917_v47  ;;  %v504_v47 = vpack.c.bf16 %v498_v43, %v498_v43 }
  0x9c   : > { %1378 = vmatprep.subr.bf16.mxu1 %v1925_v49  ;;  %739 = vmatpush1.bf16.msra.mxu0 %v1952_v54  ;;  %v2007_v49 = vld [vmem:[%s2797_s3 + $0x70] ss:$8 sps:$4 sm:$0xff]   ;;  %v2018_v54 = vld [vmem:[%s2797_s3 + $0xa4] ss:$8 sps:$4 sm:$0xff]  }
  0x9d   : > { %740 = vmatprep.subr.bf16.mxu0 %v1956_v56  ;;  %v2021_v56 = vld [vmem:[%s2797_s3 + $0xb4] ss:$8 sps:$4 sm:$0xff]  }
  0x9f   : > { %1379 = vmatpush1.bf16.msra.mxu1 %v1923_v51  ;;  %v2010_v51 = vld [vmem:[%s2797_s3 + $0x80] ss:$8 sps:$4 sm:$0xff]  }
  0xa0   : > { %1380 = vmatprep.subr.bf16.mxu1 %v1931_v53  ;;  %741 = vmatpush1.bf16.msra.mxu0 %v1958_v58  ;;  %v2013_v53 = vld [vmem:[%s2797_s3 + $0x90] ss:$8 sps:$4 sm:$0xff]   ;;  %v2024_v58 = vld [vmem:[%s2797_s3 + $0xc4] ss:$8 sps:$4 sm:$0xff]  }
  0xa1   : > { %742 = vmatprep.subr.bf16.mxu0 %v1962_v60  ;;  %v2027_v60 = vld [vmem:[%s2797_s3 + $0xd4] ss:$8 sps:$4 sm:$0xff]  }
  0xa3   : > { %1381 = vmatpush1.bf16.msra.mxu1 %v1929_v55  ;;  %v2016_v55 = vld [vmem:[%s2797_s3 + $0xa0] ss:$8 sps:$4 sm:$0xff]  }
  0xa4   : > { %1382 = vmatprep.subr.bf16.mxu1 %v1937_v57  ;;  %743 = vmatpush1.bf16.msra.mxu0 %v1964_v62  ;;  %v2019_v57 = vld [vmem:[%s2797_s3 + $0xb0] ss:$8 sps:$4 sm:$0xff]   ;;  %v2030_v62 = vld [vmem:[%s2797_s3 + $0xe4] ss:$8 sps:$4 sm:$0xff]  }
  0xa5   : > { %1292 = vmatprep.subr.bf16.mxu0 %v1970_v0  ;;  %v2033_v0 = vld [vmem:[%s2797_s3 + $0xf4] ss:$8 sps:$4 sm:$0xff]  }
  0xa7   : > { %1383 = vmatpush1.bf16.msra.mxu1 %v1935_v59  ;;  %v2022_v59 = vld [vmem:[%s2797_s3 + $0xc0] ss:$8 sps:$4 sm:$0xff]  }
  0xa8   : > { %1384 = vmatprep.subr.bf16.mxu1 %v1943_v61  ;;  %v2025_v61 = vld [vmem:[%s2797_s3 + $0xd0] ss:$8 sps:$4 sm:$0xff]  }
  0xab   : > { %1385 = vmatpush1.bf16.msra.mxu1 %v1941_v63  ;;  %v2028_v63 = vld [vmem:[%s2797_s3 + $0xe0] ss:$8 sps:$4 sm:$0xff]  }
  0xac   : > { %1386 = vmatprep.subr.bf16.mxu1 %v1949_v2  ;;  %v497_v2 = vld [vmem:[%s2341_s27] sm:$0xff] }
  0xad   : > { %v503_v3 = vpack.c.bf16 %v497_v2, %v497_v2 }
  0xaf   : > { %1387 = vmatpush1.bf16.msra.mxu1 %v1947_v4  ;;  %v281_v4 = vlaneseq }
  0xb0   : > { %1388 = vmatprep.subr.bf16.mxu1 %v1955_v5 }
  0xb1   : > { %v2684_v5 = vshrl.u32 %v281_v4, 7 }
  0xb3   : > { %1389 = vmatpush1.bf16.msra.mxu1 %v1953_v6  ;;  %v2687_v6 = vsub.s32 0, %v2684_v5  ;;  %vm289_vm0 = vcmp.eq.s32.totalorder %v2684_v5, 0 }
  0xb4   : > { %1390 = vmatprep.subr.bf16.mxu1 %v1961_v7  ;;  %v276_v7 = vld [vmem:[%s2798_s4] ss:$4 sm:$0x3] }
  0xb7   : > { %1391 = vmatpush1.bf16.msra.mxu1 %v1959_v8  ;;  %v2693_v8 = vsub.s32 1, %v2684_v5 }
  0xb8   : > { %1392 = vmatprep.subr.bf16.mxu1 %v1967_v9  ;;  %v513_v9 = vrot.slane %v276_v7, %v2687_v6 }
  0xbb   : > { %1393 = vmatpush1.bf16.msra.mxu1 %v1965_v10  ;;  %v517_v10 = vrot.slane %v276_v7, %v2693_v8  ;;  %v1633_v7 = vld [vmem:[%s2798_s4 + $0x2] ss:$4 sm:$0x3] }
  0xbc   : > { %1394 = vmatprep.subr.bf16.mxu1 %v1973_v11 }
  0xbf   : > { %1395 = vmatpush1.bf16.msra.mxu1 %v1971_v12 }
  0xc0   : > { %1396 = vmatprep.subr.bf16.mxu1 %v1979_v15 }
  0xc3   : > { %1397 = vmatpush1.bf16.msra.mxu1 %v1977_v18 }
  0xc4   : > { %v544_v13 = vpop.trf.xlu0  ;;  %1398 = vmatprep.subr.bf16.mxu1 %v1985_v20 }
  0xc5   : > { %744 = vmatprep.mubr.bf16.mxu0 %v544_v13  ;;  %v528_v17 = vpop.trf.xlu1 }
  0xc6   : > { %745 = vmatmul.mubr.bf16.vlgmr.msra.gmra.mrb[0].mxu0 %v528_v17 }
  0xc7   : > { %1293 = vmatpush1.bf16.msra.mxu0 %v1968_v14  ;;  %1399 = vmatpush1.bf16.msra.mxu1 %v1983_v23 }
  0xc8   : > { %v545_v21 = vpop.trf.xlu0  ;;  %1294 = vmatprep.subr.bf16.mxu0 %v1976_v16  ;;  %1400 = vmatprep.subr.bf16.mxu1 %v1991_v25 }
  0xc9   : > { %754 = vmatprep.mubr.bf16.mxu0 %v545_v21  ;;  %v529_v26 = vpop.trf.xlu1 }
  0xcb   : > { %1295 = vmatpush1.bf16.msra.mxu0 %v1974_v19  ;;  %1401 = vmatpush1.bf16.msra.mxu1 %v1989_v29 }
  0xcc   : > { %1296 = vmatprep.subr.bf16.mxu0 %v1982_v22  ;;  %v546_v28 = vpop.trf.xlu0  ;;  %1402 = vmatprep.subr.bf16.mxu1 %v1997_v31 }
  0xcd   : > { %v530_v36 = vpop.trf.xlu1 }
  0xce   : > { %755 = vmatmul.mubr.bf16.gmra.mrb[4].mxu0 %v529_v26 }
  0xcf   : > { %1297 = vmatpush1.bf16.msra.mxu0 %v1980_v24  ;;  %764 = vmatprep.mubr.bf16.mxu0 %v546_v28 }
  0xd0   : > { %1298 = vmatprep.subr.bf16.mxu0 %v1988_v27  ;;  %v547_v38 = vpop.trf.xlu0  ;;  %1403 = vmatpush1.bf16.msra.mxu1 %v1995_v33 }
  0xd1   : > { %1404 = vmatprep.subr.bf16.mxu1 %v2003_v35  ;;  %v531_v46 = vpop.trf.xlu1 }
  0xd3   : > { %1299 = vmatpush1.bf16.msra.mxu0 %v1986_v30 }
  0xd4   : > { %1300 = vmatprep.subr.bf16.mxu0 %v1994_v32  ;;  %1405 = vmatpush1.bf16.msra.mxu1 %v2001_v39 }
  0xd6   : > { %765 = vmatmul.mubr.bf16.gmra.mrb[8].mxu0 %v530_v36 }
  0xd7   : > { %1301 = vmatpush1.bf16.msra.mxu0 %v1992_v34  ;;  %774 = vmatprep.mubr.bf16.mxu0 %v547_v38 }
  0xd8   : > { %1302 = vmatprep.subr.bf16.mxu0 %v2000_v37  ;;  %1407 = vmatmul.mubr.bf16.vlgmr.msra.gmra.mrb[0].mxu1 %v507_v44 }
  0xdb   : > { %1303 = vmatpush1.bf16.msra.mxu0 %v1998_v41 }
  0xdc   : > { %1304 = vmatprep.subr.bf16.mxu0 %v2006_v42 }
  0xde   : > { %775 = vmatmul.mubr.bf16.gmra.mrb[12].mxu0 %v531_v46 }
  0xdf   : > { %1305 = vmatpush1.bf16.msra.mxu0 %v2004_v45  ;;  %1324 = vmatprep.mubr.bf16.mxu0 %v504_v47 }
  0xe0   : > { %1306 = vmatprep.subr.bf16.mxu0 %v2009_v48 }
  0xe3   : > { %1307 = vmatpush1.bf16.msra.mxu0 %v2007_v49 }
  0xe4   : > { %1308 = vmatprep.subr.bf16.mxu0 %v2012_v50 }
  0xe7   : > { %1309 = vmatpush1.bf16.msra.mxu0 %v2010_v51 }
  0xe8   : > { %1310 = vmatprep.subr.bf16.mxu0 %v2015_v52 }
  0xeb   : > { %1311 = vmatpush1.bf16.msra.mxu0 %v2013_v53 }
  0xec   : > { %1312 = vmatprep.subr.bf16.mxu0 %v2018_v54 }
  0xef   : > { %1313 = vmatpush1.bf16.msra.mxu0 %v2016_v55 }
  0xf0   : > { %1314 = vmatprep.subr.bf16.mxu0 %v2021_v56 }
  0xf3   : > { %1315 = vmatpush1.bf16.msra.mxu0 %v2019_v57 }
  0xf4   : > { %1316 = vmatprep.subr.bf16.mxu0 %v2024_v58 }
  0xf7   : > { %1317 = vmatpush1.bf16.msra.mxu0 %v2022_v59 }
  0xf8   : > { %1318 = vmatprep.subr.bf16.mxu0 %v2027_v60 }
  0xfb   : > { %1319 = vmatpush1.bf16.msra.mxu0 %v2025_v61 }
  0xfc   : > { %1320 = vmatprep.subr.bf16.mxu0 %v2030_v62 }
  0xff   : > { %1321 = vmatpush1.bf16.msra.mxu0 %v2028_v63  ;;  %v1632_v63 = vld [vmem:[%s2798_s4 + $0x1] ss:$4 sm:$0x3] }
 0x100   : > { %1322 = vmatprep.subr.bf16.mxu0 %v2033_v0  ;;  %v805_v0 = vrot.slane %v1632_v63, %v2687_v6 }
 0x103   : > { %1323 = vmatpush1.bf16.msra.mxu0 %v2031_v1  ;;  %v809_v1 = vrot.slane %v1632_v63, %v2693_v8 }
 0x106   : > { %1325 = vmatmul.mubr.bf16.vlgmr.msra.gmra.mrb[16].mxu0 %v503_v3 }
 0x199   : > { %v746_v11 = vpop.f32.mrb[0].mxu0 }
 0x19a   : > { %v747_v12 = vadd.f32 %v746_v11, %v513_v9  ;;  %v748_v13 = vpop.f32.mrb[1].mxu0 }
 0x19b   : > { %v749_v14 = vadd.f32 %v748_v13, %v517_v10  ;;  %v750_v15 = vpop.f32.mrb[2].mxu0 }
 0x19c   : > { %v785_v16 = vmax.f32 %v747_v12, 0.0  ;;  %v751_v17 = vadd.f32 %v750_v15, %v513_v9  ;;  %v752_v18 = vpop.f32.mrb[3].mxu0 }
 0x19d   : > { %v786_v19 = vmax.f32 %v749_v14, 0.0  ;;  %v753_v20 = vadd.f32 %v752_v18, %v517_v10  ;;  %v300_v14 = vrot.slane %v1633_v7, %v2687_v6 }
 0x19e   : > { %1417 = vxpose.xlu0.b32.start [1/10] (short) %v785_v16, 128  ;;  %v787_v21 = vmax.f32 %v751_v17, 0.0  ;;  %v304_v16 = vrot.slane %v1633_v7, %v2693_v8 }
 0x19f   : > { %1449 = vxpose.xlu1.b32.start [1/10] (short) %v786_v19, 128  ;;  %v788_v22 = vmax.f32 %v753_v20, 0.0  ;;  %v307_v18 = vsel %vm289_vm0, %v300_v14, 0.0 }
 0x1a0   : > { %v308_v19 = vsel %vm289_vm0, %v304_v16, 0.0 }
 0x1a1   : > { %v756_v23 = vpop.f32.mrb[4].mxu0 }
 0x1a2   : > { %1418 = vxpose.xlu0.b32.cont [2/10] (short) %v787_v21, 128  ;;  %v757_v24 = vadd.f32 %v756_v23, %v513_v9  ;;  %v758_v25 = vpop.f32.mrb[5].mxu0 }
 0x1a3   : > { %1450 = vxpose.xlu1.b32.cont [2/10] (short) %v788_v22, 128  ;;  %v759_v26 = vadd.f32 %v758_v25, %v517_v10  ;;  %v760_v27 = vpop.f32.mrb[6].mxu0 }
 0x1a4   : > { %v789_v28 = vmax.f32 %v757_v24, 0.0  ;;  %v761_v29 = vadd.f32 %v760_v27, %v513_v9  ;;  %v762_v30 = vpop.f32.mrb[7].mxu0 }
 0x1a5   : > { %v790_v31 = vmax.f32 %v759_v26, 0.0  ;;  %v763_v32 = vadd.f32 %v762_v30, %v517_v10 }
 0x1a6   : > { %v791_v33 = vmax.f32 %v761_v29, 0.0  ;;  %1419 = vxpose.xlu0.b32.cont [3/10] (short) %v789_v28, 128 }
 0x1a7   : > { %v792_v34 = vmax.f32 %v763_v32, 0.0  ;;  %1451 = vxpose.xlu1.b32.cont [3/10] (short) %v790_v31, 128 }
 0x1a9   : > { %v766_v35 = vpop.f32.mrb[8].mxu0 }
 0x1aa   : > { %v767_v36 = vadd.f32 %v766_v35, %v513_v9  ;;  %v768_v37 = vpop.f32.mrb[9].mxu0  ;;  %1420 = vxpose.xlu0.b32.cont [4/10] (short) %v791_v33, 128 }
 0x1ab   : > { %v769_v38 = vadd.f32 %v768_v37, %v517_v10  ;;  %1452 = vxpose.xlu1.b32.cont [4/10] (short) %v792_v34, 128  ;;  %v770_v39 = vpop.f32.mrb[10].mxu0  ;;  %v1408_v47 = vpop.f32.mrb[0].mxu1 }
 0x1ac   : > { %v793_v40 = vmax.f32 %v767_v36, 0.0  ;;  %v771_v41 = vadd.f32 %v770_v39, %v513_v9  ;;  %v772_v42 = vpop.f32.mrb[11].mxu0  ;;  %v1410_v48 = vpop.f32.mrb[1].mxu1 }
 0x1ad   : > { %v794_v43 = vmax.f32 %v769_v38, 0.0  ;;  %v773_v44 = vadd.f32 %v772_v42, %v517_v10  ;;  %v1412_v50 = vpop.f32.mrb[2].mxu1 }
 0x1ae   : > { %v795_v45 = vmax.f32 %v771_v41, 0.0  ;;  %1421 = vxpose.xlu0.b32.cont [5/10] (short) %v793_v40, 128  ;;  %v1413_v53 = vpop.f32.mrb[3].mxu1 }
 0x1af   : > { %v796_v46 = vmax.f32 %v773_v44, 0.0  ;;  %1453 = vxpose.xlu1.b32.cont [5/10] (short) %v794_v43, 128 }
 0x1b1   : > { %v776_v49 = vpop.f32.mrb[12].mxu0 }
 0x1b2   : > { %v777_v51 = vadd.f32 %v776_v49, %v513_v9  ;;  %v778_v52 = vpop.f32.mrb[13].mxu0  ;;  %1422 = vxpose.xlu0.b32.cont [6/10] (short) %v795_v45, 128 }
 0x1b3   : > { %v779_v54 = vadd.f32 %v778_v52, %v517_v10  ;;  %1454 = vxpose.xlu1.b32.cont [6/10] (short) %v796_v46, 128  ;;  %v780_v55 = vpop.f32.mrb[14].mxu0 }
 0x1b4   : > { %v797_v56 = vmax.f32 %v777_v51, 0.0  ;;  %v781_v57 = vadd.f32 %v780_v55, %v513_v9  ;;  %v782_v58 = vpop.f32.mrb[15].mxu0 }
 0x1b5   : > { %v798_v59 = vmax.f32 %v779_v54, 0.0  ;;  %v783_v60 = vadd.f32 %v782_v58, %v517_v10 }
 0x1b6   : > { %v799_v61 = vmax.f32 %v781_v57, 0.0  ;;  %1423 = vxpose.xlu0.b32.cont [7/10] (short) %v797_v56, 128 }
 0x1b7   : > { %v800_v62 = vmax.f32 %v783_v60, 0.0  ;;  %1455 = vxpose.xlu1.b32.cont [7/10] (short) %v798_v59, 128 }
 0x1ba   : > { %1424 = vxpose.xlu0.b32.cont [8/10] (short) %v799_v61, 128 }
 0x1bb   : > { %1456 = vxpose.xlu1.b32.cont [8/10] (short) %v800_v62, 128 }
 0x1d9   : > { %v1326_v2 = vpop.f32.mrb[16].mxu0 }
 0x1da   : > { %v1327_v3 = vadd.f32 %v1326_v2, %v805_v0  ;;  %v1328_v4 = vpop.f32.mrb[17].mxu0 }
 0x1db   : > { %v1329_v9 = vadd.f32 %v1328_v4, %v809_v1  ;;  %v1330_v10 = vpop.f32.mrb[18].mxu0 }
 0x1dc   : > { %v1770_v11 = vadd.f32 %v1408_v47, %v1327_v3  ;;  %v1331_v12 = vpop.f32.mrb[19].mxu0 }
 0x1dd   : > { %v1772_v13 = vadd.f32 %v1410_v48, %v1329_v9 }
 0x1de   : > { %v1415_v15 = vmax.f32 %v1770_v11, 0.0 }
 0x1df   : > { %v1416_v17 = vmax.f32 %v1772_v13, 0.0 }
 0x1e0   : > { %1425 = vxpose.xlu0.b32.cont [9/10] (short) %v1415_v15, 128 }
 0x1e1   : > { %1457 = vxpose.xlu1.b32.cont [9/10] (short) %v1416_v17, 128 }
 0x1e4   : > { %1426 = vxpose.xlu0.b32.end [10/10] (short) %v307_v18, 128 }
 0x1e5   : > { %1458 = vxpose.xlu1.b32.end [10/10] (short) %v308_v19, 128 }
 0x240   : > { %v1433_v20 = vpop.trf.xlu0 }
 0x241   : > { %v1465_v21 = vpop.trf.xlu1  ;;  %1481 = vst [vmem:[%s2709_s12] sm:$0xff] %v1433_v20 }
 0x242   : > { %1497 = vst [vmem:[%s2709_s12 + $0x80] sm:$0xff] %v1465_v21 }
 0x244   : > { %v1434_v5 = vpop.trf.xlu0 }
 0x245   : > { %v1466_v6 = vpop.trf.xlu1  ;;  %1482 = vst [vmem:[%s2709_s12 + $0x8] sm:$0xff] %v1434_v5 }
 0x246   : > { %1498 = vst [vmem:[%s2709_s12 + $0x88] sm:$0xff] %v1466_v6 }
 0x248   : > { %v1435_v8 = vpop.trf.xlu0 }
 0x249   : > { %v1467_v22 = vpop.trf.xlu1  ;;  %1483 = vst [vmem:[%s2709_s12 + $0x10] sm:$0xff] %v1435_v8 }
 0x24a   : > { %1499 = vst [vmem:[%s2709_s12 + $0x90] sm:$0xff] %v1467_v22 }
 0x24c   : > { %v1436_v23 = vpop.trf.xlu0 }
 0x24d   : > { %v1468_v24 = vpop.trf.xlu1  ;;  %1484 = vst [vmem:[%s2709_s12 + $0x18] sm:$0xff] %v1436_v23 }
 0x24e   : > { %1500 = vst [vmem:[%s2709_s12 + $0x98] sm:$0xff] %v1468_v24 }
 0x250   : > { %v1437_v25 = vpop.trf.xlu0 }
 0x251   : > { %v1469_v26 = vpop.trf.xlu1  ;;  %1485 = vst [vmem:[%s2709_s12 + $0x20] sm:$0xff] %v1437_v25 }
 0x252   : > { %1501 = vst [vmem:[%s2709_s12 + $0xa0] sm:$0xff] %v1469_v26 }
 0x254   : > { %v1438_v27 = vpop.trf.xlu0 }
 0x255   : > { %v1470_v28 = vpop.trf.xlu1  ;;  %1486 = vst [vmem:[%s2709_s12 + $0x28] sm:$0xff] %v1438_v27 }
 0x256   : > { %1502 = vst [vmem:[%s2709_s12 + $0xa8] sm:$0xff] %v1470_v28 }
 0x258   : > { %v1439_v29 = vpop.trf.xlu0 }
 0x259   : > { %v1471_v30 = vpop.trf.xlu1  ;;  %1487 = vst [vmem:[%s2709_s12 + $0x30] sm:$0xff] %v1439_v29 }
 0x25a   : > { %1503 = vst [vmem:[%s2709_s12 + $0xb0] sm:$0xff] %v1471_v30 }
 0x25c   : > { %v1440_v31 = vpop.trf.xlu0 }
 0x25d   : > { %v1472_v32 = vpop.trf.xlu1  ;;  %1488 = vst [vmem:[%s2709_s12 + $0x38] sm:$0xff] %v1440_v31 }
 0x25e   : > { %1504 = vst [vmem:[%s2709_s12 + $0xb8] sm:$0xff] %v1472_v32 }
 0x260   : > { %v1441_v33 = vpop.trf.xlu0 }
 0x261   : > { %v1473_v34 = vpop.trf.xlu1  ;;  %1489 = vst [vmem:[%s2709_s12 + $0x40] sm:$0xff] %v1441_v33 }
 0x262   : > { %1505 = vst [vmem:[%s2709_s12 + $0xc0] sm:$0xff] %v1473_v34 }
 0x264   : > { %v1442_v35 = vpop.trf.xlu0 }
 0x265   : > { %v1474_v36 = vpop.trf.xlu1  ;;  %1490 = vst [vmem:[%s2709_s12 + $0x48] sm:$0xff] %v1442_v35 }
 0x266   : > { %1506 = vst [vmem:[%s2709_s12 + $0xc8] sm:$0xff] %v1474_v36 }
 0x268   : > { %v1443_v37 = vpop.trf.xlu0 }
 0x269   : > { %v1475_v38 = vpop.trf.xlu1  ;;  %1491 = vst [vmem:[%s2709_s12 + $0x50] sm:$0xff] %v1443_v37 }
 0x26a   : > { %1507 = vst [vmem:[%s2709_s12 + $0xd0] sm:$0xff] %v1475_v38 }
 0x26c   : > { %v1444_v39 = vpop.trf.xlu0 }
 0x26d   : > { %v1476_v40 = vpop.trf.xlu1  ;;  %1492 = vst [vmem:[%s2709_s12 + $0x58] sm:$0xff] %v1444_v39 }
 0x26e   : > { %1508 = vst [vmem:[%s2709_s12 + $0xd8] sm:$0xff] %v1476_v40 }
 0x270   : > { %v1445_v41 = vpop.trf.xlu0 }
 0x271   : > { %v1477_v42 = vpop.trf.xlu1  ;;  %1493 = vst [vmem:[%s2709_s12 + $0x60] sm:$0xff] %v1445_v41 }
 0x272   : > { %1509 = vst [vmem:[%s2709_s12 + $0xe0] sm:$0xff] %v1477_v42 }
 0x274   : > { %v1446_v43 = vpop.trf.xlu0 }
 0x275   : > { %v1478_v44 = vpop.trf.xlu1  ;;  %1494 = vst [vmem:[%s2709_s12 + $0x68] sm:$0xff] %v1446_v43 }
 0x276   : > { %1510 = vst [vmem:[%s2709_s12 + $0xe8] sm:$0xff] %v1478_v44 }
 0x278   : > { %v1447_v45 = vpop.trf.xlu0 }
 0x279   : > { %v1479_v46 = vpop.trf.xlu1  ;;  %1495 = vst [vmem:[%s2709_s12 + $0x70] sm:$0xff] %v1447_v45 }
 0x27a   : > { %1511 = vst [vmem:[%s2709_s12 + $0xf0] sm:$0xff] %v1479_v46 }
 0x27c   : > { %v1448_v47 = vpop.trf.xlu0 }
 0x27d   : > { %v1480_v48 = vpop.trf.xlu1  ;;  %1496 = vst [vmem:[%s2709_s12 + $0x78] sm:$0xff] %v1448_v47 }
 0x27e   : > { %1512 = vst [vmem:[%s2709_s12 + $0xf8] sm:$0xff] %v1480_v48 }
 0x27f   : > { %2105 = shalt.err (!%p2102_p9)
}
 0x280   : > { %s2106_s27 = scalar_lea.hbm %s2746_s23, 4096  ;;  %s2110_s28 = scalar_lea.hbm %s2799_s5, 8192 }
 0x281   : > { %p2107_p2 = scmp.ne.s32.totalorder %s2746_s23, %s2106_s27  ;;  %p2111_p13 = scmp.lt.u32.totalorder %s2746_s23, %s2799_s5 }
 0x282   : > { %p2112_p1 = scmp.lt.u32.totalorder %s2110_s28, %s2106_s27  ;;  %p2114_p6 = scmp.lt.u32.totalorder %s2106_s27, %s2746_s23 }
 0x283   : > { %p2108_p5 = pnand %p2107_p2, %p2292_p12 }
 0x284   : > { %p2113_p4 = por %p2112_p1, %p2111_p13 }
 0x285   : > { %p2109_p0 = pneg %p2108_p5 }
 0x286   : > { %p2115_p8 = por %p2114_p6, %p2113_p4 }
 0x288   : > { %p2116_p10 = pnand %p2115_p8, %p2109_p0 }
 0x28a   : > { %2119 = shalt.err (!%p2116_p10)
}
 0x28b   : > { %s2169_s7 = smov 128   ;;  %s2170_s17 = smov 8  }
 0x28c   : > { %1786 = dma.vmem_to_hbm [thread:$0]  (%p2292_p12), %s2748_s13, 4096, %s2746_s23, %s1514_s26, %s2169_s7, %s2169_s7, %s2170_s17  }
 0x28d PF: > { %s1542_s15 = sand.u32 1, %s2150_s18   ;;  %p2814_p11 = scmp.ne.s32.totalorder %s2804_s25, 0 }
 0x28e   : > { %p2815_p3 = scmp.ge.s32.totalorder %s2162_s21, 2  ;;  %s1543_s22 = scalar_lea.sflag [#allocation4], %s1542_s15 }
 0x290   : > { %p1797_p7 = pnand %p2815_p3, %p2814_p11 }
 0x292   : > { %2145 = dma.done.wait (!%p1797_p7), %s1543_s22, 4096  }
 0x293   : > { %2147 = vsyncadd (!%p1797_p7), %s1543_s22, 4294963200  ;;  %p19_p9 = scmp.ge.s32.totalorder %s2257_s30, 4   ;;  %s2816_s18 = smov %s2154_s19 }
 0x294   : > { %s2817_s19 = smov %s2158_s20  ;;  %s2818_s20 = smov %s2288_s8 }
 0x295   : > { %s2819_s21 = smov %s2257_s30  ;;  %21 = sbr.rel (!%p19_p9) target bundleno = 6 (0x6), region = 94 }
 0x29c   :  { %1548 = vsyncpa [#allocation3], 1 }
 0x29d   :  { %1550 = vsyncpa [#allocation3 + $0x1], 1 }
 0x29e   :  { %1551 = vsyncpa [#allocation6], 1 }
 0x29f   :  { %1552 = vsyncpa [#allocation4], 1 }
 0x2a0   :  { %1554 = vsyncpa [#allocation4 + $0x1], 1 }

</bundles_post_ra>
